<compile_context>
chip_gen: v7x
topology: tpu7x:2x2x1
jax: 0.10.0
libtpu: 0.0.40
codegen_flags: <defaults>
</compile_context>

<pallas_src>
import jax
import jax.numpy as jnp
from jax.experimental import pallas as pl
from jax.experimental.pallas import tpu as pltpu

_LANE = 128          # lane width (last dim of the 2D slab)
_SUB = 32            # sublane granularity safe for int8 tiles
_PAD_LOGIT = -100.0  # padded logit + target 0 -> per-element loss == 0.0


def _cdiv(a, b):
    return (a + b - 1) // b


def _round_up(a, m):
    return _cdiv(a, m) * m


def _make_focal_kernel(alpha, gamma):
    alpha = float(alpha)
    gamma = float(gamma)

    def kernel(logits_ref, target_ref, out_ref):
        i = pl.program_id(1)  # inner ("arbitrary") reduction axis

        @pl.when(i == 0)
        def _():
            out_ref[...] = jnp.zeros_like(out_ref)

        x = logits_ref[...].astype(jnp.float32)
        t = target_ref[...].astype(jnp.float32)

        # Numerically-stable binary cross-entropy with logits (reduction='none').
        logpt = jnp.maximum(x, 0.0) - x * t + jnp.log(1.0 + jnp.exp(-jnp.abs(x)))
        pt = jnp.exp(-logpt)
        omp = 1.0 - pt
        if gamma == 2.0:
            focal = omp * omp
        else:
            focal = jnp.power(omp, jnp.float32(gamma))
        loss = focal * logpt * (alpha * t + (1.0 - alpha) * (1.0 - t))

        # Accumulate along the sublane-tiled axis only (VALU adds of whole
        # (8,128) vreg tiles); the cross-lane reduction happens once, outside.
        partial = jnp.sum(loss.reshape(-1, 8, _LANE), axis=0)   # (8, 128)
        out_ref[...] += partial.reshape(out_ref.shape)

    return kernel


def focal_loss(y_hat, y, *, alpha=0.25, gamma=2.0,
               block_rows_max=4096, num_parts=2):
    """Binary focal loss with logits; y_hat float logits, y integer/bool targets."""
    total = int(y_hat.size)

    flat_x = y_hat.reshape(-1)
    flat_t = y.reshape(-1)
    if flat_t.dtype != jnp.int8:
        flat_t = flat_t.astype(jnp.int8)   # binary targets: 1 B/elem of HBM traffic

    # Lane-dense layout: (rows, 128), rows tiled along the grid.
    rows = _cdiv(total, _LANE)
    block_rows = min(block_rows_max, _round_up(_cdiv(rows, num_parts), _SUB))
    blocks_per_part = _cdiv(rows, num_parts * block_rows)
    # Shrink the tile to minimize tail padding while keeping the same grid.
    block_rows = min(block_rows,
                     _round_up(_cdiv(rows, num_parts * blocks_per_part), _SUB))
    rows_padded = num_parts * blocks_per_part * block_rows
    padded_total = rows_padded * _LANE

    pad = padded_total - total
    if pad:
        flat_x = jnp.pad(flat_x, (0, pad), constant_values=_PAD_LOGIT)
        flat_t = jnp.pad(flat_t, (0, pad))           # zeros -> zero loss
    x2d = flat_x.reshape(rows_padded, _LANE)
    t2d = flat_t.reshape(rows_padded, _LANE)

    kernel = _make_focal_kernel(alpha, gamma)

    partials = pl.pallas_call(
        kernel,
        out_shape=jax.ShapeDtypeStruct((num_parts, 8, _LANE), jnp.float32),
        grid_spec=pltpu.PrefetchScalarGridSpec(
            num_scalar_prefetch=0,
            grid=(num_parts, blocks_per_part),
            in_specs=[
                pl.BlockSpec((block_rows, _LANE),
                             lambda p, i: (p * blocks_per_part + i, 0)),
                pl.BlockSpec((block_rows, _LANE),
                             lambda p, i: (p * blocks_per_part + i, 0)),
            ],
            out_specs=pl.BlockSpec((1, 8, _LANE), lambda p, i: (p, 0, 0)),
        ),
        compiler_params=pltpu.CompilerParams(
            dimension_semantics=("parallel", "arbitrary"),
        ),
    )(x2d, t2d)

    # Single cross-lane reduction + mean over the true element count.
    return jnp.sum(partials) / jnp.float32(total)


def _focal_loss_ref(y_hat, y, alpha=0.25, gamma=2.0):
    """Pure-JAX reference matching smp FocalLoss(mode='binary', alpha=0.25)."""
    x = y_hat.astype(jnp.float32).reshape(-1)
    t = y.astype(jnp.int32).astype(jnp.float32).reshape(-1)
    logpt = jnp.maximum(x, 0.0) - x * t + jnp.log(1.0 + jnp.exp(-jnp.abs(x)))
    pt = jnp.exp(-logpt)
    focal = (1.0 - pt) ** gamma
    loss = focal * logpt * (alpha * t + (1.0 - alpha) * (1.0 - t))
    return jnp.mean(loss)


if __name__ == "__main__":
    key = jax.random.PRNGKey(0)
    k1, k2 = jax.random.split(key)

    N, C, H, W = 2, 1, 16, 16
    y_hat = jax.random.normal(k1, (N, C, H, W), dtype=jnp.float32)
    y = jax.random.bernoulli(k2, p=0.4, shape=(N, C, H, W)).astype(jnp.int32)  # y.long()

    loss = focal_loss(y_hat, y)
    loss = jax.block_until_ready(loss)

    ref = _focal_loss_ref(y_hat, y)
    assert jnp.allclose(loss, ref, atol=1e-5, rtol=1e-5), (loss, ref)

    print("KERNEL_OK")
</pallas_src>

<mosaic_0001>
module attributes {stable_mosaic.version = 11 : i64} {
  func.func @kernel(%arg0: i32, %arg1: i32, %arg2: memref<32x128xf32, #tpu.memory_space<vmem>>, %arg3: memref<32x128xi8, #tpu.memory_space<vmem>>, %arg4: memref<1x8x128xf32, #tpu.memory_space<vmem>>) attributes {dimension_semantics = [#tpu.dimension_semantics<parallel>, #tpu.dimension_semantics<arbitrary>], iteration_bounds = array<i64: 2, 1>, scalar_prefetch = 0 : i64, scratch_operands = 0 : i64, tpu.core_type = #tpu.core_type<tc>, window_params = [{transform_indices = @transform_0, window_bounds = array<i64: 32, 128>}, {transform_indices = @transform_1, window_bounds = array<i64: 32, 128>}, {transform_indices = @transform_2, window_bounds = array<i64: 1, 8, 128>}]} {
    %c0_i32 = arith.constant 0 : i32
    %0 = arith.cmpi eq, %arg1, %c0_i32 : i32
    %1 = arith.extui %0 : i1 to i32
    %c0_i32_0 = arith.constant 0 : i32
    %2 = arith.cmpi ne, %1, %c0_i32_0 : i32
    scf.if %2 {
      %cst_18 = arith.constant 0.000000e+00 : f32
      %39 = vector.broadcast %cst_18 : f32 to vector<1x8x128xf32>
      %c0_19 = arith.constant 0 : index
      %c0_20 = arith.constant 0 : index
      %c0_21 = arith.constant 0 : index
      %40 = vector.load %arg4[%c0_19, %c0_20, %c0_21] : memref<1x8x128xf32, #tpu.memory_space<vmem>>, vector<1x8x128xf32>
      tpu.vector_store %arg4[%c0_19, %c0_20, %c0_21], %39 {strides = array<i32>} : memref<1x8x128xf32, #tpu.memory_space<vmem>>, vector<1x8x128xf32>,
    } else {
    }
    %c0 = arith.constant 0 : index
    %c0_1 = arith.constant 0 : index
    %3 = vector.load %arg2[%c0, %c0_1] : memref<32x128xf32, #tpu.memory_space<vmem>>, vector<32x128xf32>
    %c0_2 = arith.constant 0 : index
    %c0_3 = arith.constant 0 : index
    %4 = vector.load %arg3[%c0_2, %c0_3] : memref<32x128xi8, #tpu.memory_space<vmem>>, vector<32x128xi8>
    %5 = arith.sitofp %4 : vector<32x128xi8> to vector<32x128xf32>
    %cst = arith.constant 0.000000e+00 : f32
    %6 = vector.broadcast %cst : f32 to vector<32x128xf32>
    %7 = arith.maximumf %3, %6 : vector<32x128xf32>
    %8 = arith.mulf %3, %5 : vector<32x128xf32>
    %9 = arith.subf %7, %8 : vector<32x128xf32>
    %10 = math.absf %3 : vector<32x128xf32>
    %cst_4 = arith.constant 0.000000e+00 : f32
    %11 = vector.broadcast %cst_4 : f32 to vector<32x128xf32>
    %12 = arith.subf %11, %10 : vector<32x128xf32>
    %13 = math.exp %12 : vector<32x128xf32>
    %cst_5 = arith.constant 1.000000e+00 : f32
    %14 = vector.broadcast %cst_5 : f32 to vector<32x128xf32>
    %15 = arith.addf %14, %13 : vector<32x128xf32>
    %16 = math.log %15 : vector<32x128xf32>
    %17 = arith.addf %9, %16 : vector<32x128xf32>
    %cst_6 = arith.constant 0.000000e+00 : f32
    %18 = vector.broadcast %cst_6 : f32 to vector<32x128xf32>
    %19 = arith.subf %18, %17 : vector<32x128xf32>
    %20 = math.exp %19 : vector<32x128xf32>
    %cst_7 = arith.constant 1.000000e+00 : f32
    %21 = vector.broadcast %cst_7 : f32 to vector<32x128xf32>
    %22 = arith.subf %21, %20 : vector<32x128xf32>
    %23 = arith.mulf %22, %22 : vector<32x128xf32>
    %24 = arith.mulf %23, %17 : vector<32x128xf32>
    %cst_8 = arith.constant 2.500000e-01 : f32
    %25 = vector.broadcast %cst_8 : f32 to vector<32x128xf32>
    %26 = arith.mulf %25, %5 : vector<32x128xf32>
    %cst_9 = arith.constant 1.000000e+00 : f32
    %27 = vector.broadcast %cst_9 : f32 to vector<32x128xf32>
    %28 = arith.subf %27, %5 : vector<32x128xf32>
    %cst_10 = arith.constant 7.500000e-01 : f32
    %29 = vector.broadcast %cst_10 : f32 to vector<32x128xf32>
    %30 = arith.mulf %29, %28 : vector<32x128xf32>
    %31 = arith.addf %26, %30 : vector<32x128xf32>
    %32 = arith.mulf %24, %31 : vector<32x128xf32>
    %33 = vector.shape_cast %32 : vector<32x128xf32> to vector<4x8x128xf32>
    %cst_11 = arith.constant dense<0.000000e+00> : vector<8x128xf32>
    %34 = vector.multi_reduction <add>, %33, %cst_11 [0] : vector<4x8x128xf32> to vector<8x128xf32>
    %c0_12 = arith.constant 0 : index
    %c0_13 = arith.constant 0 : index
    %c0_14 = arith.constant 0 : index
    %35 = vector.load %arg4[%c0_12, %c0_13, %c0_14] : memref<1x8x128xf32, #tpu.memory_space<vmem>>, vector<1x8x128xf32>
    %36 = vector.shape_cast %34 : vector<8x128xf32> to vector<1x8x128xf32>
    %37 = arith.addf %35, %36 : vector<1x8x128xf32>
    %c0_15 = arith.constant 0 : index
    %c0_16 = arith.constant 0 : index
    %c0_17 = arith.constant 0 : index
    %38 = vector.load %arg4[%c0_15, %c0_16, %c0_17] : memref<1x8x128xf32, #tpu.memory_space<vmem>>, vector<1x8x128xf32>
    tpu.vector_store %arg4[%c0_15, %c0_16, %c0_17], %37 {strides = array<i32>} : memref<1x8x128xf32, #tpu.memory_space<vmem>>, vector<1x8x128xf32>,
    return
  }
  func.func @transform_0(%arg0: i32, %arg1: i32) -> (i32, i32) {
    %c1_i32 = arith.constant 1 : i32
    %0 = arith.muli %arg0, %c1_i32 : i32
    %1 = arith.addi %0, %arg1 : i32
    %c0_i32 = arith.constant 0 : i32
    %c0_i32_0 = arith.constant 0 : i32
    return %1, %c0_i32 : i32, i32
  }
  func.func @transform_1(%arg0: i32, %arg1: i32) -> (i32, i32) {
    %c1_i32 = arith.constant 1 : i32
    %0 = arith.muli %arg0, %c1_i32 : i32
    %1 = arith.addi %0, %arg1 : i32
    %c0_i32 = arith.constant 0 : i32
    %c0_i32_0 = arith.constant 0 : i32
    return %1, %c0_i32 : i32, i32
  }
  func.func @transform_2(%arg0: i32, %arg1: i32) -> (i32, i32, i32) {
    %c0_i32 = arith.constant 0 : i32
    %c0_i32_0 = arith.constant 0 : i32
    %c0_i32_1 = arith.constant 0 : i32
    return %arg0, %c0_i32, %c0_i32_0 : i32, i32, i32
  }
}

</mosaic_0001>

<bundles_post_ra>
// kernel: tpu_custom_call.1
= control target key start
LH: loop header
LB: loop body
LE: loop exit
PB: predicated region body
PF: predicated region fallthrough
CT: control target
= control target key end

     0   :  { %7 = vsyncpa [#allocation3], 0  ;;  %s948_s0 = inlined_call_operand.hbm [shape: f32[64,128], index: 0, kind: input, shape index: {}]   ;;  %s949_s1 = inlined_call_operand.hbm [shape: s8[64,128], index: 1, kind: input, shape index: {}]   ;;  %s950_s2 = inlined_call_operand.hbm [shape: f32[2,8,128], index: 2, kind: output, shape index: {}]  }
   0x1   :  { %9 = vsyncpa [#allocation3 + $0x1], 0 }
   0x2   :  { %10 = vsyncpa [#allocation6], 0 }
   0x3   :  { %12 = vsyncpa [#allocation6 + $0x1], 0 }
   0x4   :  { %13 = vsyncpa [#allocation4], 0 }
   0x5   :  { %15 = vsyncpa [#allocation4 + $0x1], 0  ;;  %s729_s9 = smov 0   ;;  %s731_s10 = smov 0  }
   0x6   :  { %s733_s11 = smov 0   ;;  %s735_s12 = smov 0  }
   0x7   :  { %s737_s13 = smov 0   ;;  %s739_s14 = smov 0  }
   0x8 LB: > { %s449_s15 = sadd.s32 4294967295, %s707_s14   ;;  %s450_s16 = sadd.s32 4294967294, %s707_s14   ;;  %s707_s14 = sphi %s739_s14, %s21_s14   ;;  %s703_s13 = sphi %s737_s13, %s969_s13   ;;  %s699_s12 = sphi %s735_s12, %s968_s12   ;;  %s695_s11 = sphi %s733_s11, %s967_s11   ;;  %s691_s10 = sphi %s731_s10, %s966_s10   ;;  %s687_s9 = sphi %s729_s9, %s965_s9  }
   0x9   : > { %s33_s17 = sadd.s32 1, %s703_s13  ;;  %s42_s18 = sadd.s32 1, %s695_s11 }
   0xa   : > { %p35_p0 = scmp.ge.s32.totalorder %s33_s17, 2  ;;  %p49_p1 = scmp.ne.s32.totalorder %s695_s11, %s691_s10 }
   0xb   : > { %p50_p2 = scmp.eq.s32.totalorder %s707_s14, 0  ;;  %p55_p3 = scmp.ne.s32.totalorder %s691_s10, %s687_s9 }
   0xc   : > { %s971_s17 = smov (%p35_p0, %s33_s17), 0  ;;  %p56_p5 = scmp.eq.s32.totalorder %s449_s15, 0 }
   0xd   : > { %p770_p4 = por %p50_p2, %p49_p1  ;;  %s39_s20 = ssub.s32 %s703_s13, %s971_s17 }
   0xe   : > { %p107_p6 = scmp.eq.s32.totalorder %s449_s15, 1  ;;  %p40_p7 = scmp.eq.s32.totalorder %s39_s20, 0 }
   0xf   : > { %p776_p8 = por %p56_p5, %p55_p3  ;;  %p113_p10 = scmp.eq.s32.totalorder %s450_s16, 1 }
  0x10   : > { %p780_p9 = por %p107_p6, %p49_p1  ;;  %p484_p13 = scmp.lt.s32.totalorder %s707_s14, 2 }
  0x11   : > { %s954_s21 = scalar_select %p776_p8, 1, 0 }
  0x12   : > { %s955_s22 = scalar_select %p780_p9, 1, 0 }
  0x13   : > { %s785_s23 = scalar_select %p40_p7, %s695_s11, %s42_s18  }
  0x14   : > { %p787_p11 = por %p113_p10, %p55_p3  ;;  %s794_s25 = sand.u32 1, %s695_s11  }
  0x15   : > { %s453_s26 = sshll.u32 %s794_s25, 5  ;;  %s466_s27 = sshll.u32 %s703_s13, 9 }
  0x16   : > { %s956_s24 = scalar_select %p787_p11, 1, 0 }
  0x17   : > { %s801_s30 = scalar_lea.hbm %s948_s0, %s466_s27  ;;  %s137_s3 = scalar_lea.vmem [#allocation2], %s453_s26 }
  0x18   : > { %s145_s4 = sshll.u32 %s137_s3, 4  ;;  %p807_p0 = pnand %p484_p13, %p770_p4  ;;  %s803_s4 = int_to_ptr.vmem [resolvable:$true] %s145_s4 }
  0x19   : > { %s134_s6 = scalar_lea.sflag [#allocation3], %s794_s25  ;;  %s561_s7 = scalar_lea.hbm %s801_s30, 512 }
  0x1a   : > { %p562_p2 = scmp.ne.s32.totalorder %s801_s30, %s561_s7  ;;  %p563_p3 = pneg %p807_p0 }
  0x1b   : > { %s566_s16 = scalar_lea.hbm %s948_s0, 1024  ;;  %p567_p4 = scmp.lt.u32.totalorder %s801_s30, %s948_s0 }
  0x1c   : > { %p564_p5 = pnand %p563_p3, %p562_p2  ;;  %p568_p7 = scmp.lt.u32.totalorder %s566_s16, %s561_s7 }
  0x1d   : > { %p570_p13 = scmp.lt.u32.totalorder %s561_s7, %s801_s30 }
  0x1e   : > { %p565_p6 = pneg %p564_p5  ;;  %p569_p10 = por %p568_p7, %p567_p4 }
  0x20   : > { %p571_p12 = por %p570_p13, %p569_p10 }
  0x22   : > { %p572_p1 = pnand %p571_p12, %p565_p6 }
  0x24   : > { %575 = shalt.err (!%p572_p1)
}
  0x25   : > { %s576_s20 = scalar_lea.vmem %s803_s4, 512  ;;  %s709_s26 = smov [#allocation2]  }
  0x26   : > { %p577_p2 = scmp.ne.s32.totalorder %s803_s4, %s576_s20  ;;  %s581_s27 = sshll.u32 %s709_s26, 4  ;;  %s582_s27 = int_to_ptr.vmem [resolvable:$false] %s581_s27 }
  0x27   : > { %s583_s28 = scalar_lea.vmem %s582_s27, 1024  ;;  %p584_p9 = scmp.lt.s32.totalorder %s803_s4, %s582_s27 }
  0x28   : > { %p579_p5 = pnand %p577_p2, %p563_p3  ;;  %p585_p4 = scmp.lt.s32.totalorder %s583_s28, %s576_s20 }
  0x2a   : > { %p580_p11 = pneg %p579_p5  ;;  %p586_p7 = por %p585_p4, %p584_p9 }
  0x2c   : > { %p587_p10 = pnand %p586_p7, %p580_p11 }
  0x2e   : > { %590 = shalt.err (!%p587_p10)
}
  0x2f   : > { %s710_s29 = smov 128   ;;  %s711_s3 = smov 8  }
  0x30   : > { %476 = dma.hbm_to_vmem [thread:$0]  (!%p807_p0), %s801_s30, 512, %s803_s4, %s134_s6, %s710_s29, %s710_s29, %s711_s3  }
  0x31   : > { %p172_p12 = scmp.lt.s32.totalorder %s707_s14, 3  ;;  %s456_s7 = sshll.u32 %s794_s25, 3 }
  0x32   : > { %s457_s8 = sshll.u32 %s703_s13, 7  ;;  %p958_p9 = scmp.ge.s32.totalorder %s707_s14, 1 }
  0x33   : > { %s852_s19 = scalar_lea.hbm %s949_s1, %s457_s8  ;;  %s159_s20 = scalar_lea.vmem [#allocation5], %s456_s7 }
  0x34   : > { %p845_p11 = pnand %p958_p9, %p172_p12  ;;  %s167_s26 = sshll.u32 %s159_s20, 4  ;;  %s168_s26 = int_to_ptr.vmem [resolvable:$true] %s167_s26 }
  0x35   : > { %s156_s30 = scalar_lea.sflag [#allocation6], %s794_s25  ;;  %s591_s4 = scalar_lea.hbm %s852_s19, 128 }
  0x36   : > { %s959_s15 = scalar_select %p845_p11, 1, 0 }
  0x37   : > { %p592_p1 = scmp.ne.s32.totalorder %s852_s19, %s591_s4  ;;  %s596_s28 = scalar_lea.hbm %s949_s1, 256 }
  0x38   : > { %p597_p2 = scmp.lt.u32.totalorder %s852_s19, %s949_s1  ;;  %p598_p5 = scmp.lt.u32.totalorder %s596_s28, %s591_s4 }
  0x39   : > { %p594_p6 = pnand %p592_p1, %p563_p3  ;;  %p600_p7 = scmp.lt.u32.totalorder %s591_s4, %s852_s19 }
  0x3a   : > { %p599_p4 = por %p598_p5, %p597_p2 }
  0x3b   : > { %p595_p13 = pneg %p594_p6 }
  0x3c   : > { %p601_p10 = por %p600_p7, %p599_p4 }
  0x3e   : > { %p602_p12 = pnand %p601_p10, %p595_p13 }
  0x40   : > { %605 = shalt.err (!%p602_p12)
}
  0x41   : > { %s606_s25 = scalar_lea.vmem %s168_s26, 128  ;;  %s712_s7 = smov [#allocation5]  }
  0x42   : > { %p607_p9 = scmp.ne.s32.totalorder %s168_s26, %s606_s25  ;;  %s611_s8 = sshll.u32 %s712_s7, 4  ;;  %s612_s8 = int_to_ptr.vmem [resolvable:$false] %s611_s8 }
  0x43   : > { %s613_s16 = scalar_lea.vmem %s612_s8, 256  ;;  %p614_p8 = scmp.lt.s32.totalorder %s168_s26, %s612_s8 }
  0x44   : > { %p609_p1 = pnand %p607_p9, %p563_p3  ;;  %p615_p11 = scmp.lt.s32.totalorder %s613_s16, %s606_s25 }
  0x46   : > { %p610_p6 = pneg %p609_p1  ;;  %p616_p2 = por %p615_p11, %p614_p8 }
  0x48   : > { %p617_p5 = pnand %p616_p2, %p610_p6 }
  0x4a   : > { %620 = shalt.err (!%p617_p5)
}
  0x4b   : > { %479 = dma.hbm_to_vmem [thread:$0]  (!%p807_p0), %s852_s19, 128, %s168_s26, %s156_s30  }
  0x4c   : > { %p960_p13 = scmp.ne.s32.totalorder %s959_s15, 0 }
  0x4d   : > { %s877_s18 = sand.u32 (!%p960_p13), 1, %s691_s10   ;;  %p961_p3 = scmp.ne.s32.totalorder (!%p960_p13), %s954_s21, 0 }
  0x4e   : > { %176 = sbr.rel (%p960_p13) target bundleno = 168 (0xa8), region = 28  ;;  %s459_s20 = sshll.u32 (!%p960_p13), %s877_s18, 5 }
  0x4f   : > { %s179_s4 = scalar_lea.sflag (!%p960_p13), [#allocation3], %s877_s18  ;;  %s182_s6 = scalar_lea.vmem (!%p960_p13), [#allocation2], %s459_s20 }
  0x55   : > { %674 = dma.done.wait (%p961_p3), %s179_s4, 512  }
  0x56   : > { %676 = vsyncadd (%p961_p3), %s179_s4, 4294966784  ;;  %s460_s5 = sshll.u32 %s877_s18, 3  ;;  %s188_s15 = scalar_lea.sflag [#allocation6], %s877_s18 }
  0x57   : > { %s191_s19 = scalar_lea.vmem [#allocation5], %s460_s5 }
  0x58   : > { %678 = dma.done.wait (%p961_p3), %s188_s15, 128  }
  0x59   : > { %680 = vsyncadd (%p961_p3), %s188_s15, 4294967168  ;;  %v225_v0 = vld [vmem:[%s182_s6] sm:$0xff]  ;;  %v226_v1 = vld [vmem:[%s182_s6 + $0x8] sm:$0xff]  ;;  %s463_s21 = sshll.u32 %s699_s12, 7  ;;  %s216_s26 = scalar_lea.vmem [#allocation7], %s460_s5 }
  0x5a   : > { %v227_v2 = vld [vmem:[%s182_s6 + $0x10] sm:$0xff]  ;;  %v228_v3 = vld [vmem:[%s182_s6 + $0x18] sm:$0xff]  ;;  %v250_v4 = vand.u32 2147483647, %v225_v0  ;;  %v251_v5 = vand.u32 2147483647, %v226_v1  ;;  %s899_s29 = scalar_lea.hbm %s950_s2, %s463_s21 }
  0x5b   : > { %v252_v6 = vand.u32 2147483647, %v227_v2  ;;  %v253_v7 = vand.u32 2147483647, %v228_v3  ;;  %v229_v16 = vld [vmem:[%s191_s19] sm:$0xff]  ;;  %v238_v33 = vmax.f32 %v225_v0, 0.0 }
  0x5c   : > { %v254_v8 = vsub.f32 0.0, %v250_v4  ;;  %v255_v9 = vsub.f32 0.0, %v251_v5  ;;  %v230_v18 = vunpack.c.0.s8 %v229_v16  ;;  %v231_v20 = vunpack.c.1.s8 %v229_v16  ;;  %s346_s30 = sshll.u32 %s216_s26, 4  ;;  %s333_s3 = scalar_lea.sflag [#allocation4], %s877_s18  ;;  %s901_s30 = int_to_ptr.vmem [resolvable:$true] %s346_s30 }
  0x5d   : > { %v256_v10 = vsub.f32 0.0, %v252_v6  ;;  %v257_v11 = vsub.f32 0.0, %v253_v7  ;;  %v232_v23 = vunpack.c.2.s8 %v229_v16  ;;  %v233_v26 = vunpack.c.3.s8 %v229_v16  ;;  %s621_s25 = scalar_lea.vmem %s901_s30, 128  ;;  %p962_p0 = scmp.ne.s32.totalorder %s955_s22, 0 }
  0x5e   : > { %v258_v12 = vmul.f32 1.442695, %v254_v8  ;;  %v260_v13 = vmul.f32 1.442695, %v255_v9  ;;  %v234_v28 = vcvt.s32.f32 %v230_v18  ;;  %v235_v30 = vcvt.s32.f32 %v231_v20  ;;  %p622_p8 = scmp.ne.s32.totalorder %s901_s30, %s621_s25  ;;  %s713_s12 = smov [#allocation7]  }
  0x5f   : > { %v262_v14 = vmul.f32 1.442695, %v256_v10  ;;  %v264_v15 = vmul.f32 1.442695, %v257_v11  ;;  %v236_v31 = vcvt.s32.f32 %v232_v23  ;;  %v237_v32 = vcvt.s32.f32 %v233_v26  ;;  %s625_s7 = sshll.u32 %s713_s12, 4  ;;  %s626_s7 = int_to_ptr.vmem [resolvable:$false] %s625_s7 }
  0x60   : > { %537 = vpow2.f32 %v258_v12  ;;  %v242_v34 = vmul.f32 %v234_v28, %v225_v0  ;;  %v239_v35 = vmax.f32 %v226_v1, 0.0  ;;  %v243_v36 = vmul.f32 %v235_v30, %v226_v1  ;;  %p623_p11 = pnand %p622_p8, %p962_p0  ;;  %s627_s8 = scalar_lea.vmem %s626_s7, 256 }
  0x61   : > { %539 = vpow2.f32 %v260_v13  ;;  %v240_v37 = vmax.f32 %v227_v2, 0.0  ;;  %v244_v38 = vmul.f32 %v236_v31, %v227_v2  ;;  %v241_v39 = vmax.f32 %v228_v3, 0.0  ;;  %p628_p7 = scmp.lt.s32.totalorder %s901_s30, %s626_s7  ;;  %p629_p10 = scmp.lt.s32.totalorder %s627_s8, %s621_s25 }
  0x62   : > { %541 = vpow2.f32 %v262_v14  ;;  %v245_v40 = vmul.f32 %v237_v32, %v228_v3  ;;  %v246_v41 = vsub.f32 %v238_v33, %v242_v34  ;;  %v247_v43 = vsub.f32 %v239_v35, %v243_v36  ;;  %p624_p4 = pneg %p623_p11 }
  0x63   : > { %543 = vpow2.f32 %v264_v15  ;;  %v248_v45 = vsub.f32 %v240_v37, %v244_v38  ;;  %v310_v1 = vsub.f32 1.0, %v234_v28  ;;  %v311_v2 = vsub.f32 1.0, %v235_v30  ;;  %p630_p12 = por %p629_p10, %p628_p7 }
  0x64   : > { %v249_v48 = vsub.f32 %v241_v39, %v245_v40  ;;  %v312_v3 = vsub.f32 1.0, %v236_v31  ;;  %v313_v4 = vsub.f32 1.0, %v237_v32  ;;  %v306_v5 = vmul.f32 0.25, %v234_v28 }
  0x65   : > { %v314_v6 = vmul.f32 0.75, %v310_v1  ;;  %v307_v8 = vmul.f32 0.25, %v235_v30  ;;  %v315_v9 = vmul.f32 0.75, %v311_v2  ;;  %v308_v12 = vmul.f32 0.25, %v236_v31  ;;  %p631_p9 = pnand %p630_p12, %p624_p4 }
  0x66   : > { %v316_v13 = vmul.f32 0.75, %v312_v3  ;;  %v309_v16 = vmul.f32 0.25, %v237_v32 }
  0x6a   : > { %v538_v17 = vpop.eup %537 }
  0x6b   : > { %v540_v19 = vpop.eup %539  ;;  %v266_v21 = vadd.f32 1.0, %v538_v17  ;;  %v317_v17 = vmul.f32 0.75, %v313_v4 }
  0x6c   : > { %v542_v22 = vpop.eup %541  ;;  %v267_v24 = vadd.f32 1.0, %v540_v19 }
  0x6d   : > { %v544_v25 = vpop.eup %543  ;;  %v268_v27 = vadd.f32 1.0, %v542_v22  ;;  %545 = vlog2.f32 %v266_v21  ;;  %v318_v21 = vadd.f32 %v314_v6, %v306_v5  ;;  %v321_v30 = vadd.f32 %v317_v17, %v309_v16 }
  0x6e   : > { %v269_v29 = vadd.f32 1.0, %v544_v25  ;;  %547 = vlog2.f32 %v267_v24  ;;  %v319_v24 = vadd.f32 %v315_v9, %v307_v8 }
  0x6f   : > { %549 = vlog2.f32 %v268_v27  ;;  %v320_v27 = vadd.f32 %v316_v13, %v308_v12 }
  0x70   : > { %551 = vlog2.f32 %v269_v29 }
  0x77   : > { %v546_v42 = vpop.eup %545 }
  0x78   : > { %v548_v44 = vpop.eup %547  ;;  %v271_v46 = vmul.f32 0.6931472, %v546_v42 }
  0x79   : > { %v550_v47 = vpop.eup %549  ;;  %v273_v49 = vmul.f32 0.6931472, %v548_v44 }
  0x7a   : > { %v552_v50 = vpop.eup %551  ;;  %v275_v51 = vmul.f32 0.6931472, %v550_v47  ;;  %v278_v52 = vadd.f32 %v271_v46, %v246_v41 }
  0x7b   : > { %v277_v53 = vmul.f32 0.6931472, %v552_v50  ;;  %v279_v54 = vadd.f32 %v273_v49, %v247_v43 }
  0x7c   : > { %v280_v55 = vadd.f32 %v275_v51, %v248_v45  ;;  %v282_v56 = vsub.f32 0.0, %v278_v52 }
  0x7d   : > { %v281_v57 = vadd.f32 %v277_v53, %v249_v48  ;;  %v283_v58 = vsub.f32 0.0, %v279_v54 }
  0x7e   : > { %v284_v59 = vsub.f32 0.0, %v280_v55  ;;  %v286_v60 = vmul.f32 1.442695, %v282_v56 }
  0x7f   : > { %v285_v61 = vsub.f32 0.0, %v281_v57  ;;  %v288_v62 = vmul.f32 1.442695, %v283_v58 }
  0x80   : > { %553 = vpow2.f32 %v286_v60  ;;  %v290_v63 = vmul.f32 1.442695, %v284_v59 }
  0x81   : > { %555 = vpow2.f32 %v288_v62  ;;  %v292_v0 = vmul.f32 1.442695, %v285_v61 }
  0x82   : > { %557 = vpow2.f32 %v290_v63 }
  0x83   : > { %559 = vpow2.f32 %v292_v0 }
  0x8a   : > { %v554_v7 = vpop.eup %553 }
  0x8b   : > { %v556_v10 = vpop.eup %555  ;;  %v294_v11 = vsub.f32 1.0, %v554_v7 }
  0x8c   : > { %v558_v14 = vpop.eup %557  ;;  %v295_v15 = vsub.f32 1.0, %v556_v10 }
  0x8d   : > { %v560_v18 = vpop.eup %559  ;;  %v296_v19 = vsub.f32 1.0, %v558_v14  ;;  %v298_v20 = vmul.f32 %v294_v11, %v294_v11 }
  0x8e   : > { %v297_v22 = vsub.f32 1.0, %v560_v18  ;;  %v299_v23 = vmul.f32 %v295_v15, %v295_v15 }
  0x8f   : > { %v300_v25 = vmul.f32 %v296_v19, %v296_v19  ;;  %v302_v26 = vmul.f32 %v298_v20, %v278_v52 }
  0x90   : > { %v301_v28 = vmul.f32 %v297_v22, %v297_v22  ;;  %v303_v29 = vmul.f32 %v299_v23, %v279_v54 }
  0x91   : > { %v304_v31 = vmul.f32 %v300_v25, %v280_v55  ;;  %v322_v33 = vmul.f32 %v318_v21, %v302_v26 }
  0x92   : > { %v305_v32 = vmul.f32 %v301_v28, %v281_v57  ;;  %v323_v34 = vmul.f32 %v319_v24, %v303_v29 }
  0x93   : > { %v324_v35 = vmul.f32 %v320_v27, %v304_v31 }
  0x94   : > { %v325_v36 = vmul.f32 %v321_v30, %v305_v32  ;;  %v326_v37 = vadd.f32 %v323_v34, %v322_v33 }
  0x96   : > { %v327_v38 = vadd.f32 %v326_v37, %v324_v35 }
  0x98   : > { %v328_v39 = vadd.f32 %v327_v38, %v325_v36 }
  0x9a   : > { %331 = vst [vmem:[%s216_s26] sm:$0xff] %v328_v39 }
  0x9b   : > { %634 = shalt.err (!%p631_p9)
}
  0x9c   : > { %s635_s16 = scalar_lea.hbm %s899_s29, 128  ;;  %s639_s4 = scalar_lea.hbm %s950_s2, 256 }
  0x9d   : > { %p636_p1 = scmp.ne.s32.totalorder %s899_s29, %s635_s16  ;;  %p640_p5 = scmp.lt.u32.totalorder %s899_s29, %s950_s2 }
  0x9e   : > { %p641_p13 = scmp.lt.u32.totalorder %s639_s4, %s635_s16  ;;  %p643_p8 = scmp.lt.u32.totalorder %s635_s16, %s899_s29 }
  0x9f   : > { %p637_p6 = pnand %p636_p1, %p962_p0 }
  0xa0   : > { %p642_p3 = por %p641_p13, %p640_p5 }
  0xa1   : > { %p638_p2 = pneg %p637_p6 }
  0xa2   : > { %p644_p11 = por %p643_p8, %p642_p3 }
  0xa4   : > { %p645_p4 = pnand %p644_p11, %p638_p2 }
  0xa6   : > { %648 = shalt.err (!%p645_p4)
}
  0xa7   : > { %471 = dma.vmem_to_hbm [thread:$0]  (%p962_p0), %s901_s30, 128, %s899_s29, %s333_s3  }
  0xa8 PF: > { %s358_s15 = sand.u32 1, %s687_s9   ;;  %p963_p7 = scmp.ne.s32.totalorder %s956_s24, 0 }
  0xa9   : > { %p964_p10 = scmp.ge.s32.totalorder %s707_s14, 2  ;;  %s359_s19 = scalar_lea.sflag [#allocation4], %s358_s15 }
  0xab   : > { %p481_p12 = pnand %p964_p10, %p963_p7 }
  0xad   : > { %682 = dma.done.wait (!%p481_p12), %s359_s19, 128  }
  0xae   : > { %684 = vsyncadd (!%p481_p12), %s359_s19, 4294967168  ;;  %s21_s14 = sadd.s32 1, %s707_s14   ;;  %s965_s9 = smov %s691_s10 }
  0xaf   : > { %p18_p9 = scmp.ge.s32.totalorder %s21_s14, 4   ;;  %s966_s10 = smov %s695_s11 }
  0xb0   : > { %s967_s11 = smov %s785_s23  ;;  %s968_s12 = smov %s703_s13 }
  0xb1   : > { %s969_s13 = smov %s971_s17  ;;  %20 = sbr.rel (!%p18_p9) target bundleno = 8 (0x8), region = 90 }
  0xb8   :  { %364 = vsyncpa [#allocation3], 1 }
  0xb9   :  { %366 = vsyncpa [#allocation3 + $0x1], 1 }
  0xba   :  { %367 = vsyncpa [#allocation6], 1 }
  0xbb   :  { %369 = vsyncpa [#allocation6 + $0x1], 1 }
  0xbc   :  { %370 = vsyncpa [#allocation4], 1 }
  0xbd   :  { %372 = vsyncpa [#allocation4 + $0x1], 1 }

</bundles_post_ra>
